<compile_context>
chip_gen: v7x
topology: tpu7x:2x2x1
jax: 0.10.0
libtpu: 0.0.40
codegen_flags: <defaults>
</compile_context>

<pallas_src>
import jax
import jax.numpy as jnp
from jax import lax
from jax.experimental import pallas as pl
from jax.experimental.pallas import tpu as pltpu

BN_EPS = 1e-5

# Parameters the kernel actually consumes.  Linear biases (b1..b3) are NOT here:
# the training-mode BatchNorm right after each Linear subtracts the per-feature
# batch mean, so a constant per-feature bias cancels exactly.  init_params still
# creates them and the pure-JAX reference still applies them, proving equivalence.
KERNEL_PARAM_KEYS = (
    "w1", "g1", "be1",
    "w2", "g2", "be2",
    "w3", "g3", "be3",
)


def _categorical_reward_kernel(state_ref,
                               w1_ref, g1_ref, be1_ref,
                               w2_ref, g2_ref, be2_ref,
                               w3_ref, g3_ref, be3_ref,
                               out_ref):
    """3x (Linear(no-bias) -> BN(train) -> ReLU) -> softmax, fully VMEM-resident."""

    def linear_bn_relu(h_lhs, w_ref, g_ref, be_ref, *, out_bf16):
        # Linear: bf16 x bf16 MXU matmul with f32 accumulation.
        # (Bias omitted: BN mean-subtraction below cancels it exactly.)
        h = jnp.dot(h_lhs, w_ref[...], preferred_element_type=jnp.float32)

        # BatchNorm1d training mode: one-pass batch stats (biased variance).
        inv_b = 1.0 / h.shape[0]
        mean = jnp.sum(h, axis=0, keepdims=True) * inv_b
        mean_sq = jnp.sum(h * h, axis=0, keepdims=True) * inv_b
        var = jnp.maximum(mean_sq - mean * mean, 0.0)

        # Fold gamma into the rsqrt scale and the whole BN affine into a single
        # (B,H)-wide FMA.  scale/shift are tiny (1,H) precomputes; rsqrt runs on
        # the EUP slot.
        scale = g_ref[...] * lax.rsqrt(var + BN_EPS)   # (1,H)
        shift = be_ref[...] - mean * scale             # (1,H)
        h = jnp.maximum(h * scale + shift, 0.0)

        # Hand the next matmul its LHS already in bf16 (the cast happens anyway);
        # halves the live inter-layer activation footprint.  The last layer
        # stays f32 since it feeds the softmax, not another matmul.
        return h.astype(jnp.bfloat16) if out_bf16 else h

    h = state_ref[...].astype(jnp.bfloat16)
    h = linear_bn_relu(h, w1_ref, g1_ref, be1_ref, out_bf16=True)
    h = linear_bn_relu(h, w2_ref, g2_ref, be2_ref, out_bf16=True)
    h = linear_bn_relu(h, w3_ref, g3_ref, be3_ref, out_bf16=False)

    # Softmax over the feature axis.  Approximate reciprocal keeps the divide on
    # the EUP slot; one Newton step on the (B,1) column (negligible VPU cost)
    # restores row sums to ~1 ulp of 1.0.
    m = jnp.max(h, axis=-1, keepdims=True)
    e = jnp.exp(h - m)
    denom = jnp.sum(e, axis=-1, keepdims=True)
    inv = pl.reciprocal(denom, approx=True)
    inv = inv * (2.0 - denom * inv)                    # Newton refinement
    out_ref[...] = (e * inv).astype(out_ref.dtype)


def _vmem_limit_bytes(B, S, H):
    """Scoped-VMEM budget sized to the real operands (with 2x headroom)."""
    weights = (S * H + 2 * H * H) * 2      # bf16 weights
    bn_params = 6 * H * 4                  # gamma/beta, f32
    state = B * S * 4                      # f32 input
    act_f32 = B * H * 4                    # live post-matmul f32 activation
    act_tmp = 2 * B * H * 4                # h*h / exp temporaries
    act_bf16 = B * H * 2                   # bf16 inter-layer LHS
    out = B * H * 4                        # f32 softmax output
    needed = weights + bn_params + state + act_f32 + act_tmp + act_bf16 + out
    # Floor at the 32 MiB scoped default, cap under the 128 MiB physical VMEM of
    # v5e/v6e.  TODO(synk): on v7x (64 MiB VMEM) cap at ~48 MiB and fall back to
    # the batch-tiled two-pass BN structure above that.
    return int(min(max(2 * needed, 32 << 20), 100 << 20))


def categorical_reward_forward(state, params):
    """Single-invocation (grid-less) pallas_call; all operands resident in VMEM."""
    B, S = state.shape
    H = params["w1"].shape[1]

    operands = [state] + [params[k] for k in KERNEL_PARAM_KEYS]
    vmem_spec = pl.BlockSpec(memory_space=pltpu.MemorySpace.VMEM)

    # Advisory cost hint so XLA schedules the surrounding graph sensibly.
    matmul_flops = 2 * B * (S * H + 2 * H * H)
    elementwise_flops = 3 * 8 * B * H + 6 * B * H      # BN/ReLU + softmax, rough
    cost = pl.CostEstimate(
        flops=matmul_flops + elementwise_flops,
        transcendentals=B * H + 3 * H + B,             # exp + rsqrt + reciprocal
        bytes_accessed=sum(int(op.nbytes) for op in operands) + B * H * 4,
    )

    return pl.pallas_call(
        _categorical_reward_kernel,
        out_shape=jax.ShapeDtypeStruct((B, H), jnp.float32),
        in_specs=[vmem_spec] * len(operands),
        out_specs=vmem_spec,
        compiler_params=pltpu.CompilerParams(
            vmem_limit_bytes=_vmem_limit_bytes(B, S, H)),
        cost_estimate=cost,
    )(*operands)


def init_params(key, state_dim, hidden_dim):
    """PyTorch-default-style init.

    Linear weights stored pre-transposed (in, out) and cast to bf16 (halves
    HBM->VMEM bytes, doubles MXU rate on v6e/v7x).  Biases are created for the
    reference only (BN cancels them, the kernel never loads them).
    BatchNorm1d: gamma=1, beta=0 kept in f32 (post-matmul VPU/EUP math is f32,
    incl. on v5e which has no bf16 VPU/EUP).
    """
    params = {}
    dims = [(state_dim, hidden_dim), (hidden_dim, hidden_dim), (hidden_dim, hidden_dim)]
    for idx, (fan_in, fan_out) in enumerate(dims, start=1):
        key, kw, kb = jax.random.split(key, 3)
        bound = 1.0 / jnp.sqrt(float(fan_in))
        w = jax.random.uniform(kw, (fan_in, fan_out), jnp.float32,
                               minval=-bound, maxval=bound)
        params[f"w{idx}"] = w.astype(jnp.bfloat16)
        params[f"b{idx}"] = jax.random.uniform(kb, (1, fan_out), jnp.float32,
                                               minval=-bound, maxval=bound)
        params[f"g{idx}"] = jnp.ones((1, fan_out), jnp.float32)
        params[f"be{idx}"] = jnp.zeros((1, fan_out), jnp.float32)
    return params


def reference_forward(state, params):
    """Pure-JAX reference: Linear(+bias) -> BN(train, biased var, eps=1e-5) -> ReLU,
    x3, then softmax.  Matmul LHS operands are rounded to bf16 exactly as the
    kernel does, isolating kernel correctness; the bias add is kept here to show
    that dropping it inside the kernel is mathematically exact."""
    h = state.astype(jnp.float32)
    for idx in (1, 2, 3):
        lhs = h.astype(jnp.bfloat16).astype(jnp.float32)
        w = params[f"w{idx}"].astype(jnp.float32)
        h = lhs @ w + params[f"b{idx}"]
        mu = jnp.mean(h, axis=0, keepdims=True)
        var = jnp.mean((h - mu) ** 2, axis=0, keepdims=True)
        h = (h - mu) / jnp.sqrt(var + BN_EPS)
        h = h * params[f"g{idx}"] + params[f"be{idx}"]
        h = jnp.maximum(h, 0.0)
    return jax.nn.softmax(h, axis=-1)


if __name__ == "__main__":
    BATCH = 16       # multiple of 16 -> full bf16 sublane packing on the MXU LHS
    STATE_DIM = 4    # state_dim != 1 -> num_atoms=8 (unused by forward)
    HIDDEN = 128     # lane-aligned small stand-in for the default hidden_dim=512

    key = jax.random.PRNGKey(0)
    key, kx = jax.random.split(key)
    state = jax.random.normal(kx, (BATCH, STATE_DIM), dtype=jnp.float32)
    params = init_params(key, STATE_DIM, HIDDEN)

    out = jax.block_until_ready(categorical_reward_forward(state, params))
    ref = reference_forward(state, params)

    assert out.shape == (BATCH, HIDDEN)
    # Newton-refined reciprocal -> rows sum to 1 at f32 rounding level.
    assert jnp.allclose(jnp.sum(out, axis=-1), 1.0, atol=1e-5)
    # Remaining deltas vs. the reference are bf16 matmul rounding / summation
    # order and the one-pass BN stats; structural errors would be orders larger.
    assert jnp.allclose(out, ref, atol=1e-4, rtol=2e-3)

    print("KERNEL_OK")
</pallas_src>

<mosaic_0001>
module attributes {stable_mosaic.version = 11 : i64} {
  func.func @_categorical_reward_kernel(%arg0: memref<16x4xf32, #tpu.memory_space<vmem>>, %arg1: memref<4x128xbf16, #tpu.memory_space<vmem>>, %arg2: memref<1x128xf32, #tpu.memory_space<vmem>>, %arg3: memref<1x128xf32, #tpu.memory_space<vmem>>, %arg4: memref<128x128xbf16, #tpu.memory_space<vmem>>, %arg5: memref<1x128xf32, #tpu.memory_space<vmem>>, %arg6: memref<1x128xf32, #tpu.memory_space<vmem>>, %arg7: memref<128x128xbf16, #tpu.memory_space<vmem>>, %arg8: memref<1x128xf32, #tpu.memory_space<vmem>>, %arg9: memref<1x128xf32, #tpu.memory_space<vmem>>, %arg10: memref<16x128xf32, #tpu.memory_space<vmem>>) attributes {dimension_semantics = [], scalar_prefetch = 0 : i64, scratch_operands = 0 : i64, tpu.core_type = #tpu.core_type<tc>} {
    %c0 = arith.constant 0 : index
    %c0_0 = arith.constant 0 : index
    %0 = vector.load %arg0[%c0, %c0_0] : memref<16x4xf32, #tpu.memory_space<vmem>>, vector<16x4xf32>
    %1 = arith.truncf %0 : vector<16x4xf32> to vector<16x4xbf16>
    %c0_1 = arith.constant 0 : index
    %c0_2 = arith.constant 0 : index
    %2 = vector.load %arg1[%c0_1, %c0_2] : memref<4x128xbf16, #tpu.memory_space<vmem>>, vector<4x128xbf16>
    %cst = arith.constant dense<0.000000e+00> : vector<16x128xf32>
    %3 = tpu.matmul %1, %2, %cst {dimension_numbers = #tpu.dot_dimension_numbers<[1], [0], [0], [1], [0, 0, 1, 1], [], []>} : vector<16x4xbf16>, vector<4x128xbf16>, vector<16x128xf32> -> vector<16x128xf32>
    %cst_3 = arith.constant dense<0.000000e+00> : vector<128xf32>
    %4 = vector.multi_reduction <add>, %3, %cst_3 [0] : vector<16x128xf32> to vector<128xf32>
    %5 = vector.shape_cast %4 : vector<128xf32> to vector<1x128xf32>
    %cst_4 = arith.constant 6.250000e-02 : f32
    %6 = vector.broadcast %cst_4 : f32 to vector<1x128xf32>
    %7 = arith.mulf %5, %6 : vector<1x128xf32>
    %8 = arith.mulf %3, %3 : vector<16x128xf32>
    %cst_5 = arith.constant dense<0.000000e+00> : vector<128xf32>
    %9 = vector.multi_reduction <add>, %8, %cst_5 [0] : vector<16x128xf32> to vector<128xf32>
    %10 = vector.shape_cast %9 : vector<128xf32> to vector<1x128xf32>
    %cst_6 = arith.constant 6.250000e-02 : f32
    %11 = vector.broadcast %cst_6 : f32 to vector<1x128xf32>
    %12 = arith.mulf %10, %11 : vector<1x128xf32>
    %13 = arith.mulf %7, %7 : vector<1x128xf32>
    %14 = arith.subf %12, %13 : vector<1x128xf32>
    %cst_7 = arith.constant 0.000000e+00 : f32
    %15 = vector.broadcast %cst_7 : f32 to vector<1x128xf32>
    %16 = arith.maximumf %14, %15 : vector<1x128xf32>
    %c0_8 = arith.constant 0 : index
    %c0_9 = arith.constant 0 : index
    %17 = vector.load %arg2[%c0_8, %c0_9] : memref<1x128xf32, #tpu.memory_space<vmem>>, vector<1x128xf32>
    %cst_10 = arith.constant 9.99999974E-6 : f32
    %18 = vector.broadcast %cst_10 : f32 to vector<1x128xf32>
    %19 = arith.addf %16, %18 : vector<1x128xf32>
    %20 = math.rsqrt %19 : vector<1x128xf32>
    %21 = arith.mulf %17, %20 : vector<1x128xf32>
    %c0_11 = arith.constant 0 : index
    %c0_12 = arith.constant 0 : index
    %22 = vector.load %arg3[%c0_11, %c0_12] : memref<1x128xf32, #tpu.memory_space<vmem>>, vector<1x128xf32>
    %23 = arith.mulf %7, %21 : vector<1x128xf32>
    %24 = arith.subf %22, %23 : vector<1x128xf32>
    %25 = vector.broadcast %21 : vector<1x128xf32> to vector<16x128xf32>
    %26 = arith.mulf %3, %25 : vector<16x128xf32>
    %27 = vector.broadcast %24 : vector<1x128xf32> to vector<16x128xf32>
    %28 = arith.addf %26, %27 : vector<16x128xf32>
    %cst_13 = arith.constant 0.000000e+00 : f32
    %29 = vector.broadcast %cst_13 : f32 to vector<16x128xf32>
    %30 = arith.maximumf %28, %29 : vector<16x128xf32>
    %31 = arith.truncf %30 : vector<16x128xf32> to vector<16x128xbf16>
    %c0_14 = arith.constant 0 : index
    %c0_15 = arith.constant 0 : index
    %32 = vector.load %arg4[%c0_14, %c0_15] : memref<128x128xbf16, #tpu.memory_space<vmem>>, vector<128x128xbf16>
    %cst_16 = arith.constant dense<0.000000e+00> : vector<16x128xf32>
    %33 = tpu.matmul %31, %32, %cst_16 {dimension_numbers = #tpu.dot_dimension_numbers<[1], [0], [0], [1], [0, 0, 1, 1], [], []>} : vector<16x128xbf16>, vector<128x128xbf16>, vector<16x128xf32> -> vector<16x128xf32>
    %cst_17 = arith.constant dense<0.000000e+00> : vector<128xf32>
    %34 = vector.multi_reduction <add>, %33, %cst_17 [0] : vector<16x128xf32> to vector<128xf32>
    %35 = vector.shape_cast %34 : vector<128xf32> to vector<1x128xf32>
    %cst_18 = arith.constant 6.250000e-02 : f32
    %36 = vector.broadcast %cst_18 : f32 to vector<1x128xf32>
    %37 = arith.mulf %35, %36 : vector<1x128xf32>
    %38 = arith.mulf %33, %33 : vector<16x128xf32>
    %cst_19 = arith.constant dense<0.000000e+00> : vector<128xf32>
    %39 = vector.multi_reduction <add>, %38, %cst_19 [0] : vector<16x128xf32> to vector<128xf32>
    %40 = vector.shape_cast %39 : vector<128xf32> to vector<1x128xf32>
    %cst_20 = arith.constant 6.250000e-02 : f32
    %41 = vector.broadcast %cst_20 : f32 to vector<1x128xf32>
    %42 = arith.mulf %40, %41 : vector<1x128xf32>
    %43 = arith.mulf %37, %37 : vector<1x128xf32>
    %44 = arith.subf %42, %43 : vector<1x128xf32>
    %cst_21 = arith.constant 0.000000e+00 : f32
    %45 = vector.broadcast %cst_21 : f32 to vector<1x128xf32>
    %46 = arith.maximumf %44, %45 : vector<1x128xf32>
    %c0_22 = arith.constant 0 : index
    %c0_23 = arith.constant 0 : index
    %47 = vector.load %arg5[%c0_22, %c0_23] : memref<1x128xf32, #tpu.memory_space<vmem>>, vector<1x128xf32>
    %cst_24 = arith.constant 9.99999974E-6 : f32
    %48 = vector.broadcast %cst_24 : f32 to vector<1x128xf32>
    %49 = arith.addf %46, %48 : vector<1x128xf32>
    %50 = math.rsqrt %49 : vector<1x128xf32>
    %51 = arith.mulf %47, %50 : vector<1x128xf32>
    %c0_25 = arith.constant 0 : index
    %c0_26 = arith.constant 0 : index
    %52 = vector.load %arg6[%c0_25, %c0_26] : memref<1x128xf32, #tpu.memory_space<vmem>>, vector<1x128xf32>
    %53 = arith.mulf %37, %51 : vector<1x128xf32>
    %54 = arith.subf %52, %53 : vector<1x128xf32>
    %55 = vector.broadcast %51 : vector<1x128xf32> to vector<16x128xf32>
    %56 = arith.mulf %33, %55 : vector<16x128xf32>
    %57 = vector.broadcast %54 : vector<1x128xf32> to vector<16x128xf32>
    %58 = arith.addf %56, %57 : vector<16x128xf32>
    %cst_27 = arith.constant 0.000000e+00 : f32
    %59 = vector.broadcast %cst_27 : f32 to vector<16x128xf32>
    %60 = arith.maximumf %58, %59 : vector<16x128xf32>
    %61 = arith.truncf %60 : vector<16x128xf32> to vector<16x128xbf16>
    %c0_28 = arith.constant 0 : index
    %c0_29 = arith.constant 0 : index
    %62 = vector.load %arg7[%c0_28, %c0_29] : memref<128x128xbf16, #tpu.memory_space<vmem>>, vector<128x128xbf16>
    %cst_30 = arith.constant dense<0.000000e+00> : vector<16x128xf32>
    %63 = tpu.matmul %61, %62, %cst_30 {dimension_numbers = #tpu.dot_dimension_numbers<[1], [0], [0], [1], [0, 0, 1, 1], [], []>} : vector<16x128xbf16>, vector<128x128xbf16>, vector<16x128xf32> -> vector<16x128xf32>
    %cst_31 = arith.constant dense<0.000000e+00> : vector<128xf32>
    %64 = vector.multi_reduction <add>, %63, %cst_31 [0] : vector<16x128xf32> to vector<128xf32>
    %65 = vector.shape_cast %64 : vector<128xf32> to vector<1x128xf32>
    %cst_32 = arith.constant 6.250000e-02 : f32
    %66 = vector.broadcast %cst_32 : f32 to vector<1x128xf32>
    %67 = arith.mulf %65, %66 : vector<1x128xf32>
    %68 = arith.mulf %63, %63 : vector<16x128xf32>
    %cst_33 = arith.constant dense<0.000000e+00> : vector<128xf32>
    %69 = vector.multi_reduction <add>, %68, %cst_33 [0] : vector<16x128xf32> to vector<128xf32>
    %70 = vector.shape_cast %69 : vector<128xf32> to vector<1x128xf32>
    %cst_34 = arith.constant 6.250000e-02 : f32
    %71 = vector.broadcast %cst_34 : f32 to vector<1x128xf32>
    %72 = arith.mulf %70, %71 : vector<1x128xf32>
    %73 = arith.mulf %67, %67 : vector<1x128xf32>
    %74 = arith.subf %72, %73 : vector<1x128xf32>
    %cst_35 = arith.constant 0.000000e+00 : f32
    %75 = vector.broadcast %cst_35 : f32 to vector<1x128xf32>
    %76 = arith.maximumf %74, %75 : vector<1x128xf32>
    %c0_36 = arith.constant 0 : index
    %c0_37 = arith.constant 0 : index
    %77 = vector.load %arg8[%c0_36, %c0_37] : memref<1x128xf32, #tpu.memory_space<vmem>>, vector<1x128xf32>
    %cst_38 = arith.constant 9.99999974E-6 : f32
    %78 = vector.broadcast %cst_38 : f32 to vector<1x128xf32>
    %79 = arith.addf %76, %78 : vector<1x128xf32>
    %80 = math.rsqrt %79 : vector<1x128xf32>
    %81 = arith.mulf %77, %80 : vector<1x128xf32>
    %c0_39 = arith.constant 0 : index
    %c0_40 = arith.constant 0 : index
    %82 = vector.load %arg9[%c0_39, %c0_40] : memref<1x128xf32, #tpu.memory_space<vmem>>, vector<1x128xf32>
    %83 = arith.mulf %67, %81 : vector<1x128xf32>
    %84 = arith.subf %82, %83 : vector<1x128xf32>
    %85 = vector.broadcast %81 : vector<1x128xf32> to vector<16x128xf32>
    %86 = arith.mulf %63, %85 : vector<16x128xf32>
    %87 = vector.broadcast %84 : vector<1x128xf32> to vector<16x128xf32>
    %88 = arith.addf %86, %87 : vector<16x128xf32>
    %cst_41 = arith.constant 0.000000e+00 : f32
    %89 = vector.broadcast %cst_41 : f32 to vector<16x128xf32>
    %90 = arith.maximumf %88, %89 : vector<16x128xf32>
    %cst_42 = arith.constant dense<0xFF800000> : vector<16xf32>
    %91 = vector.multi_reduction <maximumf>, %90, %cst_42 [1] : vector<16x128xf32> to vector<16xf32>
    %92 = vector.shape_cast %91 : vector<16xf32> to vector<16x1xf32>
    %93 = vector.broadcast %92 : vector<16x1xf32> to vector<16x128xf32>
    %94 = arith.subf %90, %93 : vector<16x128xf32>
    %95 = math.exp %94 : vector<16x128xf32>
    %cst_43 = arith.constant dense<0.000000e+00> : vector<16xf32>
    %96 = vector.multi_reduction <add>, %95, %cst_43 [1] : vector<16x128xf32> to vector<16xf32>
    %97 = vector.shape_cast %96 : vector<16xf32> to vector<16x1xf32>
    %98 = tpu.reciprocal %97 {approx = true} : vector<16x1xf32> -> vector<16x1xf32>
    %99 = arith.mulf %97, %98 : vector<16x1xf32>
    %cst_44 = arith.constant 2.000000e+00 : f32
    %100 = vector.broadcast %cst_44 : f32 to vector<16x1xf32>
    %101 = arith.subf %100, %99 : vector<16x1xf32>
    %102 = arith.mulf %98, %101 : vector<16x1xf32>
    %103 = vector.broadcast %102 : vector<16x1xf32> to vector<16x128xf32>
    %104 = arith.mulf %95, %103 : vector<16x128xf32>
    %c0_45 = arith.constant 0 : index
    %c0_46 = arith.constant 0 : index
    %105 = vector.load %arg10[%c0_45, %c0_46] : memref<16x128xf32, #tpu.memory_space<vmem>>, vector<16x128xf32>
    tpu.vector_store %arg10[%c0_45, %c0_46], %104 {strides = array<i32>} : memref<16x128xf32, #tpu.memory_space<vmem>>, vector<16x128xf32>,
    return
  }
}

</mosaic_0001>

<bundles_post_ra>
// kernel: tpu_custom_call.1
= control target key start
LH: loop header
LB: loop body
LE: loop exit
PB: predicated region body
PF: predicated region fallthrough
CT: control target
= control target key end

     0   :  { %15 = vsyncpa [#allocation3], 0  ;;  %s861_s0 = inlined_call_operand.vmem [shape: f32[16,4], index: 0, kind: input, shape index: {}]   ;;  %s862_s1 = inlined_call_operand.vmem [shape: bf16[4,128], index: 1, kind: input, shape index: {}]   ;;  %s863_s2 = inlined_call_operand.vmem [shape: f32[1,128], index: 2, kind: input, shape index: {}]   ;;  %s864_s3 = inlined_call_operand.vmem [shape: f32[1,128], index: 3, kind: input, shape index: {}]   ;;  %s865_s4 = inlined_call_operand.hbm [shape: bf16[128,128], index: 4, kind: input, shape index: {}]   ;;  %s866_s5 = inlined_call_operand.vmem [shape: f32[1,128], index: 5, kind: input, shape index: {}]   ;;  %s867_s6 = inlined_call_operand.vmem [shape: f32[1,128], index: 6, kind: input, shape index: {}]   ;;  %s868_s7 = inlined_call_operand.hbm [shape: bf16[128,128], index: 7, kind: input, shape index: {}]   ;;  %s869_s8 = inlined_call_operand.vmem [shape: f32[1,128], index: 8, kind: input, shape index: {}]   ;;  %s870_s9 = inlined_call_operand.vmem [shape: f32[1,128], index: 9, kind: input, shape index: {}]   ;;  %s871_s10 = inlined_call_operand.hbm [shape: f32[16,128], index: 10, kind: output, shape index: {}]  }
   0x1   :  { %16 = vsyncpa [#allocation6], 0 }
   0x2   :  { %17 = vsyncpa [#allocation4], 0  ;;  %s706_s13 = smov [#allocation2]   ;;  %s634_s17 = scalar_lea.hbm %s865_s4, 1024 }
   0x3   :  { %s31_s14 = sshll.u32 %s706_s13, 4  ;;  %p635_p0 = scmp.ne.s32.totalorder %s865_s4, %s634_s17  ;;  %s32_s14 = int_to_ptr.vmem [resolvable:$true] %s31_s14 }
   0x4   :  { %p638_p1 = scmp.lt.u32.totalorder %s634_s17, %s865_s4 }
   0x6   :  { %p640_p2 = pnand %p638_p1, %p635_p0 }
   0x8   :  { %643 = shalt.err (!%p640_p2)
}
   0x9   :  { %s644_s22 = scalar_lea.vmem %s32_s14, 1024  ;;  %p649_p4 = scmp.lt.s32.totalorder %s32_s14, %s32_s14 }
   0xa   :  { %p645_p3 = scmp.ne.s32.totalorder %s32_s14, %s644_s22  ;;  %p650_p5 = scmp.lt.s32.totalorder %s644_s22, %s644_s22 }
   0xc   :  { %p651_p6 = por %p650_p5, %p649_p4 }
   0xe   :  { %p652_p7 = pnand %p651_p6, %p645_p3 }
  0x10   :  { %655 = shalt.err (!%p652_p7)
}
  0x11   :  { %s707_s23 = smov 64   ;;  %s708_s24 = smov 4  }
  0x12   :  { %37 = dma.hbm_to_vmem [thread:$0]  %s865_s4, 1024, %s32_s14, [#allocation3], %s707_s23, %s707_s23, %s708_s24  }
  0x13   :  { %s709_s27 = smov [#allocation5]   ;;  %s656_s11 = scalar_lea.hbm %s868_s7, 1024 }
  0x14   :  { %s47_s28 = sshll.u32 %s709_s27, 4  ;;  %p657_p8 = scmp.ne.s32.totalorder %s868_s7, %s656_s11  ;;  %s48_s28 = int_to_ptr.vmem [resolvable:$true] %s47_s28 }
  0x15   :  { %p660_p9 = scmp.lt.u32.totalorder %s656_s11, %s868_s7 }
  0x17   :  { %p662_p10 = pnand %p660_p9, %p657_p8 }
  0x19   :  { %665 = shalt.err (!%p662_p10)
}
  0x1a   :  { %s666_s17 = scalar_lea.vmem %s48_s28, 1024  ;;  %p671_p12 = scmp.lt.s32.totalorder %s48_s28, %s48_s28 }
  0x1b   :  { %p667_p11 = scmp.ne.s32.totalorder %s48_s28, %s666_s17  ;;  %p672_p13 = scmp.lt.s32.totalorder %s666_s17, %s666_s17 }
  0x1d   :  { %p673_p0 = por %p672_p13, %p671_p12 }
  0x1f   :  { %p674_p1 = pnand %p673_p0, %p667_p11 }
  0x21   :  { %677 = shalt.err (!%p674_p1)
}
  0x22   :  { %53 = dma.hbm_to_vmem [thread:$0]  %s868_s7, 1024, %s48_s28, [#allocation6], %s707_s23, %s707_s23, %s708_s24  }
  0x23   :  { %700 = dma.done.wait [#allocation3], 1024  }
  0x24   :  { %701 = vsyncadd [#allocation3], 4294966272 }
  0x25   :  { %702 = dma.done.wait [#allocation6], 1024  }
  0x26   :  { %703 = vsyncadd [#allocation6], 4294966272  ;;  %v710_v0 = vmov 0.0   ;;  %vm711_vm0 = vmmov 0   ;;  %vm73_vm1 = vcmask 1041408   ;;  %v65_v2 = vld [vmem:[%s861_s0] sm:$0xff]  ;;  %v147_v40 = vlaneseq }
  0x27   :  { %549 = vmatprep.subr.bf16.mxu0 %v710_v0  ;;  %551 = vmatprep.mubr.msk.bf16.mxu0 %vm711_vm0, %v710_v0  ;;  %v68_v1 = vld [vmem:[%s862_s1] sm:$0x3]  ;;  %v66_v3 = vld [vmem:[%s861_s0 + $0x8] sm:$0xff]  ;;  %vm69_vm2 = vcmask 31744   ;;  %v604_v6 = vld [vmem:[#allocation2] sm:$0xff]  }
  0x28   :  { %555 = vmatprep.subr.bf16.mxu1 %v710_v0  ;;  %571 = vmatprep.mubr.msk.bf16.mxu1 %vm711_vm0, %v710_v0  ;;  %v75_v4 = vsel %vm73_vm1, %v68_v1, 0  ;;  %v67_v5 = vpack.c.bf16 %v66_v3, %v65_v2  ;;  %v605_v7 = vld [vmem:[#allocation2 + $0x8] sm:$0xff]   ;;  %v606_v8 = vld [vmem:[#allocation2 + $0x10] sm:$0xff]   ;;  %v607_v9 = vld [vmem:[#allocation2 + $0x18] sm:$0xff]   ;;  %v148_v41 = vshrl.u32 %v147_v40, 7 }
  0x29   :  { %550 = vmatpush3.bf16.msra.mxu0 %v75_v4  ;;  %556 = vmatpush3.bf16.msra.mxu1 %v604_v6  ;;  %v608_v10 = vld [vmem:[#allocation2 + $0x20] sm:$0xff]   ;;  %v609_v11 = vld [vmem:[#allocation2 + $0x28] sm:$0xff]   ;;  %v610_v12 = vld [vmem:[#allocation2 + $0x30] sm:$0xff]  }
  0x2a   :  { %575 = vmatprep.subr.bf16.mxu0 %v710_v0  ;;  %557 = vmatprep.subr.bf16.mxu1 %v710_v0  ;;  %v611_v13 = vld [vmem:[#allocation2 + $0x38] sm:$0xff]   ;;  %v139_v42 = vld [vmem:[%s863_s2] sm:$0x1]  ;;  %v819_v43 = vsub.s32 0, %v148_v41  ;;  %v612_v58 = vld [vmem:[#allocation5] sm:$0xff]  }
  0x2b   :  { %v143_v46 = vld [vmem:[%s864_s3] sm:$0x1]  ;;  %v613_v59 = vld [vmem:[#allocation5 + $0x8] sm:$0xff]   ;;  %v615_v61 = vld [vmem:[#allocation5 + $0x18] sm:$0xff]  }
  0x2c   :  { %552 = vmatmul.mubr.msk.bf16.vlgmr.msra.gmra.mrb[0].mxu0 %vm69_vm2, %v67_v5  ;;  %v614_v60 = vld [vmem:[#allocation5 + $0x10] sm:$0xff]   ;;  %v616_v62 = vld [vmem:[#allocation5 + $0x20] sm:$0xff]   ;;  %v617_v63 = vld [vmem:[#allocation5 + $0x28] sm:$0xff]  }
  0x2d   :  { %591 = vmatprep.mubr.msk.bf16.mxu0 %vm711_vm0, %v710_v0  ;;  %558 = vmatpush3.bf16.msra.mxu1 %v605_v7  ;;  %v618_v1 = vld [vmem:[#allocation5 + $0x30] sm:$0xff]   ;;  %v619_v2 = vld [vmem:[#allocation5 + $0x38] sm:$0xff]  }
  0x2e   :  { %559 = vmatprep.subr.bf16.mxu1 %v710_v0  ;;  %576 = vmatpush3.bf16.msra.mxu0 %v612_v58 }
  0x2f   :  { %577 = vmatprep.subr.bf16.mxu0 %v710_v0 }
  0x31   :  { %560 = vmatpush3.bf16.msra.mxu1 %v606_v8 }
  0x32   :  { %561 = vmatprep.subr.bf16.mxu1 %v710_v0  ;;  %578 = vmatpush3.bf16.msra.mxu0 %v613_v59 }
  0x33   :  { %579 = vmatprep.subr.bf16.mxu0 %v710_v0 }
  0x35   :  { %562 = vmatpush3.bf16.msra.mxu1 %v607_v9 }
  0x36   :  { %563 = vmatprep.subr.bf16.mxu1 %v710_v0  ;;  %580 = vmatpush3.bf16.msra.mxu0 %v614_v60 }
  0x37   :  { %581 = vmatprep.subr.bf16.mxu0 %v710_v0 }
  0x39   :  { %564 = vmatpush3.bf16.msra.mxu1 %v608_v10 }
  0x3a   :  { %565 = vmatprep.subr.bf16.mxu1 %v710_v0  ;;  %582 = vmatpush3.bf16.msra.mxu0 %v615_v61 }
  0x3b   :  { %583 = vmatprep.subr.bf16.mxu0 %v710_v0 }
  0x3d   :  { %566 = vmatpush3.bf16.msra.mxu1 %v609_v11 }
  0x3e   :  { %567 = vmatprep.subr.bf16.mxu1 %v710_v0  ;;  %584 = vmatpush3.bf16.msra.mxu0 %v616_v62 }
  0x3f   :  { %585 = vmatprep.subr.bf16.mxu0 %v710_v0 }
  0x41   :  { %568 = vmatpush3.bf16.msra.mxu1 %v610_v12 }
  0x42   :  { %569 = vmatprep.subr.bf16.mxu1 %v710_v0  ;;  %586 = vmatpush3.bf16.msra.mxu0 %v617_v63 }
  0x43   :  { %587 = vmatprep.subr.bf16.mxu0 %v710_v0 }
  0x45   :  { %570 = vmatpush3.bf16.msra.mxu1 %v611_v13 }
  0x46   :  { %588 = vmatpush3.bf16.msra.mxu0 %v618_v1 }
  0x47   :  { %589 = vmatprep.subr.bf16.mxu0 %v710_v0 }
  0x4a   :  { %590 = vmatpush3.bf16.msra.mxu0 %v619_v2 }
  0xff   :  { %v111_v14 = vpop.f32.mrb[0].mxu0 }
 0x100   :  { %v553_v15 = vpop.f32.mrb[1].mxu0  ;;  %v126_v17 = vmul.f32 %v111_v14, %v111_v14 }
 0x101   :  { %v114_v16 = vpop.f32.mrb[2].mxu0 }
 0x102   :  { %v118_v18 = vadd.f32 %v114_v16, %v111_v14  ;;  %v127_v19 = vmul.f32 %v114_v16, %v114_v16  ;;  %v554_v20 = vpop.f32.mrb[3].mxu0 }
 0x104   :  { %v119_v21 = vrot.slane %v118_v18, 4  ;;  %v128_v22 = vadd.f32 %v127_v19, %v126_v17 }
 0x106   :  { %v120_v23 = vadd.f32 %v119_v21, %v118_v18  ;;  %v129_v24 = vrot.slane %v128_v22, 4 }
 0x108   :  { %v121_v25 = vrot.slane %v120_v23, 2  ;;  %v130_v26 = vadd.f32 %v129_v24, %v128_v22 }
 0x10a   :  { %v122_v27 = vadd.f32 %v121_v25, %v120_v23  ;;  %v131_v28 = vrot.slane %v130_v26, 2 }
 0x10c   :  { %v123_v29 = vrot.slane %v122_v27, 1  ;;  %v132_v30 = vadd.f32 %v131_v28, %v130_v26  ;;  %v291_v28 = vld [vmem:[%s866_s5] sm:$0x1] }
 0x10e   :  { %v124_v31 = vadd.f32 %v123_v29, %v122_v27  ;;  %v133_v32 = vrot.slane %v132_v30, 1 }
 0x110   :  { %v125_v33 = vmul.f32 0.0625, %v124_v31  ;;  %v134_v34 = vadd.f32 %v133_v32, %v132_v30  ;;  %v295_v31 = vld [vmem:[%s867_s6] sm:$0x1] }
 0x112   :  { %v135_v35 = vmul.f32 0.0625, %v134_v34  ;;  %v136_v36 = vmul.f32 %v125_v33, %v125_v33 }
 0x114   :  { %v137_v37 = vsub.f32 %v135_v35, %v136_v36 }
 0x116   :  { %v138_v38 = vmax.f32 %v137_v37, 0.0 }
 0x118   :  { %v140_v39 = vadd.f32 1e-05, %v138_v38 }
 0x11a   :  { %620 = vrsqrt.f32 %v140_v39 }
 0x124   :  { %v621_v44 = vpop.eup %620 }
 0x125   :  { %v142_v45 = vmul.f32 %v621_v44, %v139_v42 }
 0x127   :  { %v144_v47 = vmul.f32 %v142_v45, %v125_v33  ;;  %v150_v48 = vrot.slane %v142_v45, %v819_v43 }
 0x129   :  { %v145_v49 = vsub.f32 %v143_v46, %v144_v47  ;;  %v152_v50 = vmul.f32 %v150_v48, %v111_v14  ;;  %v153_v51 = vmul.f32 %v150_v48, %v114_v16 }
 0x12b   :  { %v158_v52 = vrot.slane %v145_v49, %v819_v43 }
 0x12d   :  { %v161_v53 = vadd.f32 %v158_v52, %v153_v51  ;;  %v160_v54 = vadd.f32 %v158_v52, %v152_v50 }
 0x12f   :  { %v162_v55 = vmax.f32 %v160_v54, 0.0  ;;  %v163_v56 = vmax.f32 %v161_v53, 0.0 }
 0x131   :  { %v164_v57 = vpack.c.bf16 %v163_v56, %v162_v55 }
 0x133   :  { %572 = vmatmul.mubr.bf16.vlgmr.msra.gmra.mrb[0].mxu1 %v164_v57 }
 0x206   :  { %v263_v3 = vpop.f32.mrb[0].mxu1 }
 0x207   :  { %v573_v4 = vpop.f32.mrb[1].mxu1  ;;  %v278_v6 = vmul.f32 %v263_v3, %v263_v3 }
 0x208   :  { %v266_v5 = vpop.f32.mrb[2].mxu1 }
 0x209   :  { %v270_v7 = vadd.f32 %v266_v5, %v263_v3  ;;  %v279_v8 = vmul.f32 %v266_v5, %v266_v5  ;;  %v574_v9 = vpop.f32.mrb[3].mxu1 }
 0x20b   :  { %v271_v10 = vrot.slane %v270_v7, 4  ;;  %v280_v11 = vadd.f32 %v279_v8, %v278_v6 }
 0x20d   :  { %v272_v12 = vadd.f32 %v271_v10, %v270_v7  ;;  %v281_v13 = vrot.slane %v280_v11, 4  ;;  %v443_v7 = vld [vmem:[%s869_s8] sm:$0x1]  ;;  %s712_s8 = smov [#allocation7]  }
 0x20e   :  { %v447_v10 = vld [vmem:[%s870_s9] sm:$0x1]  ;;  %s499_s9 = sshll.u32 %s712_s8, 4  ;;  %s500_s9 = int_to_ptr.vmem [resolvable:$true] %s499_s9 }
 0x20f   :  { %v273_v14 = vrot.slane %v272_v12, 2  ;;  %v282_v15 = vadd.f32 %v281_v13, %v280_v11  ;;  %s678_s29 = scalar_lea.vmem %s500_s9, 256  ;;  %p683_p3 = scmp.lt.s32.totalorder %s500_s9, %s500_s9 }
 0x210   :  { %p679_p2 = scmp.ne.s32.totalorder %s500_s9, %s678_s29  ;;  %p684_p4 = scmp.lt.s32.totalorder %s678_s29, %s678_s29 }
 0x211   :  { %v274_v16 = vadd.f32 %v273_v14, %v272_v12  ;;  %v283_v17 = vrot.slane %v282_v15, 2 }
 0x212   :  { %p685_p5 = por %p684_p4, %p683_p3 }
 0x213   :  { %v275_v18 = vrot.slane %v274_v16, 1  ;;  %v284_v19 = vadd.f32 %v283_v17, %v282_v15 }
 0x214   :  { %p686_p6 = pnand %p685_p5, %p679_p2 }
 0x215   :  { %v276_v0 = vadd.f32 %v275_v18, %v274_v16  ;;  %v285_v20 = vrot.slane %v284_v19, 1 }
 0x217   :  { %v277_v21 = vmul.f32 0.0625, %v276_v0  ;;  %v286_v22 = vadd.f32 %v285_v20, %v284_v19 }
 0x219   :  { %v287_v23 = vmul.f32 0.0625, %v286_v22  ;;  %v288_v24 = vmul.f32 %v277_v21, %v277_v21 }
 0x21b   :  { %v289_v25 = vsub.f32 %v287_v23, %v288_v24 }
 0x21d   :  { %v290_v26 = vmax.f32 %v289_v25, 0.0 }
 0x21f   :  { %v292_v27 = vadd.f32 1e-05, %v290_v26 }
 0x221   :  { %622 = vrsqrt.f32 %v292_v27 }
 0x22b   :  { %v623_v29 = vpop.eup %622 }
 0x22c   :  { %v294_v30 = vmul.f32 %v623_v29, %v291_v28 }
 0x22e   :  { %v296_v32 = vmul.f32 %v294_v30, %v277_v21  ;;  %v302_v33 = vrot.slane %v294_v30, %v819_v43 }
 0x230   :  { %v297_v34 = vsub.f32 %v295_v31, %v296_v32  ;;  %v304_v35 = vmul.f32 %v302_v33, %v263_v3  ;;  %v305_v36 = vmul.f32 %v302_v33, %v266_v5 }
 0x232   :  { %v310_v37 = vrot.slane %v297_v34, %v819_v43 }
 0x234   :  { %v312_v38 = vadd.f32 %v310_v37, %v304_v35  ;;  %v313_v39 = vadd.f32 %v310_v37, %v305_v36 }
 0x236   :  { %v315_v40 = vmax.f32 %v313_v39, 0.0  ;;  %v314_v41 = vmax.f32 %v312_v38, 0.0 }
 0x238   :  { %v316_v42 = vpack.c.bf16 %v315_v40, %v314_v41 }
 0x23a   :  { %592 = vmatmul.mubr.bf16.vlgmr.msra.gmra.mrb[4].mxu0 %v316_v42 }
 0x30d   :  { %v415_v44 = vpop.f32.mrb[4].mxu0 }
 0x30e   :  { %v593_v45 = vpop.f32.mrb[5].mxu0  ;;  %v430_v47 = vmul.f32 %v415_v44, %v415_v44 }
 0x30f   :  { %v418_v46 = vpop.f32.mrb[6].mxu0 }
 0x310   :  { %v422_v48 = vadd.f32 %v418_v46, %v415_v44  ;;  %v431_v49 = vmul.f32 %v418_v46, %v418_v46  ;;  %v594_v50 = vpop.f32.mrb[7].mxu0 }
 0x312   :  { %v423_v51 = vrot.slane %v422_v48, 4  ;;  %v432_v52 = vadd.f32 %v431_v49, %v430_v47 }
 0x314   :  { %v424_v53 = vadd.f32 %v423_v51, %v422_v48  ;;  %v433_v54 = vrot.slane %v432_v52, 4 }
 0x316   :  { %v425_v55 = vrot.slane %v424_v53, 2  ;;  %v434_v56 = vadd.f32 %v433_v54, %v432_v52 }
 0x318   :  { %v426_v57 = vadd.f32 %v425_v55, %v424_v53  ;;  %v435_v58 = vrot.slane %v434_v56, 2 }
 0x31a   :  { %v427_v59 = vrot.slane %v426_v57, 1  ;;  %v436_v60 = vadd.f32 %v435_v58, %v434_v56 }
 0x31c   :  { %v428_v61 = vadd.f32 %v427_v59, %v426_v57  ;;  %v437_v62 = vrot.slane %v436_v60, 1 }
 0x31e   :  { %v429_v63 = vmul.f32 0.0625, %v428_v61  ;;  %v438_v1 = vadd.f32 %v437_v62, %v436_v60 }
 0x320   :  { %v439_v2 = vmul.f32 0.0625, %v438_v1  ;;  %v440_v3 = vmul.f32 %v429_v63, %v429_v63 }
 0x322   :  { %v441_v4 = vsub.f32 %v439_v2, %v440_v3 }
 0x324   :  { %v442_v5 = vmax.f32 %v441_v4, 0.0 }
 0x326   :  { %v444_v6 = vadd.f32 1e-05, %v442_v5 }
 0x328   :  { %624 = vrsqrt.f32 %v444_v6 }
 0x332   :  { %v625_v8 = vpop.eup %624 }
 0x333   :  { %v446_v9 = vmul.f32 %v625_v8, %v443_v7 }
 0x335   :  { %v454_v11 = vrot.slane %v446_v9, %v819_v43  ;;  %v448_v12 = vmul.f32 %v446_v9, %v429_v63 }
 0x337   :  { %v457_v13 = vmul.f32 %v454_v11, %v418_v46  ;;  %v449_v14 = vsub.f32 %v447_v10, %v448_v12  ;;  %v456_v15 = vmul.f32 %v454_v11, %v415_v44 }
 0x339   :  { %v462_v16 = vrot.slane %v449_v14, %v819_v43 }
 0x33b   :  { %v464_v17 = vadd.f32 %v462_v16, %v456_v15  ;;  %v465_v18 = vadd.f32 %v462_v16, %v457_v13 }
 0x33d   :  { %v466_v19 = vmax.f32 %v464_v17, 0.0  ;;  %v467_v0 = vmax.f32 %v465_v18, 0.0 }
 0x33f   :  { %468 = vmax.xlane.f32.xlu0 %v466_v19 }
 0x343   :  { %470 = vmax.xlane.f32.xlu0 %v467_v0 }
 0x3cc   :  { %v469_v20 = vpop.xlane.xlu0 %468 }
 0x3cd   :  { %v472_v21 = vsub.f32 %v466_v19, %v469_v20 }
 0x3cf   :  { %v474_v22 = vmul.f32 1.442695, %v472_v21 }
 0x3d0   :  { %v471_v23 = vpop.xlane.xlu0 %470 }
 0x3d1   :  { %626 = vpow2.f32 %v474_v22  ;;  %v473_v24 = vsub.f32 %v467_v0, %v471_v23 }
 0x3d3   :  { %v476_v25 = vmul.f32 1.442695, %v473_v24 }
 0x3d5   :  { %628 = vpow2.f32 %v476_v25 }
 0x3db   :  { %v627_v26 = vpop.eup %626 }
 0x3dc   :  { %478 = vadd.xlane.f32.xlu1 %v627_v26 }
 0x3df   :  { %v629_v27 = vpop.eup %628 }
 0x3e0   :  { %480 = vadd.xlane.f32.xlu1 %v629_v27 }
 0x469   :  { %v479_v28 = vpop.xlane.xlu1 %478 }
 0x46a   :  { %630 = vrcp.f32 %v479_v28 }
 0x46d   :  { %v481_v43 = vpop.xlane.xlu1 %480 }
 0x46e   :  { %632 = vrcp.f32 %v481_v43 }
 0x474   :  { %v631_v29 = vpop.eup %630 }
 0x475   :  { %v484_v30 = vmul.f32 %v631_v29, %v479_v28 }
 0x477   :  { %v486_v31 = vsub.f32 2.0, %v484_v30 }
 0x478   :  { %v633_v32 = vpop.eup %632 }
 0x479   :  { %v488_v33 = vmul.f32 %v631_v29, %v486_v31  ;;  %v485_v34 = vmul.f32 %v633_v32, %v481_v43 }
 0x47b   :  { %v490_v35 = vmul.f32 %v627_v26, %v488_v33  ;;  %v487_v36 = vsub.f32 2.0, %v485_v34 }
 0x47d   :  { %492 = vst [vmem:[#allocation7] sm:$0xff] %v490_v35  ;;  %v489_v37 = vmul.f32 %v633_v32, %v487_v36 }
 0x47f   :  { %v491_v38 = vmul.f32 %v629_v27, %v489_v37 }
 0x481   :  { %493 = vst [vmem:[#allocation7 + $0x8] sm:$0xff] %v491_v38 }
 0x482   :  { %689 = shalt.err (!%p686_p6)
}
 0x483   :  { %s690_s12 = scalar_lea.hbm %s871_s10, 256 }
 0x484   :  { %p691_p7 = scmp.ne.s32.totalorder %s871_s10, %s690_s12  ;;  %p694_p8 = scmp.lt.u32.totalorder %s690_s12, %s871_s10 }
 0x486   :  { %p696_p9 = pnand %p694_p8, %p691_p7 }
 0x488   :  { %699 = shalt.err (!%p696_p9)
}
 0x489   :  { %s713_s4 = smov 128   ;;  %s714_s14 = smov 8  }
 0x48a   :  { %505 = dma.vmem_to_hbm [thread:$0]  %s500_s9, 256, %s871_s10, [#allocation4], %s713_s4, %s713_s4, %s714_s14  }
 0x48b   :  { %704 = dma.done.wait [#allocation4], 256  }
 0x48c   :  { %705 = vsyncadd [#allocation4], 4294967040 }
 0x48d   :  { %509 = vsyncpa [#allocation3], 1 }
 0x48e   :  { %510 = vsyncpa [#allocation6], 1 }
 0x48f   :  { %511 = vsyncpa [#allocation4], 1 }

</bundles_post_ra>
